<compile_context>
chip_gen: v5e
topology: v5e:2x2
jax: 0.10.0
libtpu: 0.0.40
codegen_flags: <defaults>
</compile_context>

<pallas_src>
import functools
import math

import jax
import jax.numpy as jnp
from jax.experimental import pallas as pl
from jax.experimental.pallas import tpu as pltpu


def _fused_conv_conv_bn_kernel(x_ref, mask_ref, w_ref, b_ref, g_ref, bt_ref,
                               o_ref, *, width, inv_count, eps):
    """Fused conv2d(2x2) -> conv2d(2x2, same weights) -> BatchNorm (training).

    x_ref   : (C, P)         f32, channel-major, (n,h,w) flattened onto lanes
                             (stride `width` per image row), zero-padded to P.
    mask_ref: (1, P)         f32, 1.0 at lanes that are valid final-output positions.
    w_ref   : (KH*KW, C, C)  f32, w_ref[di*KW+dj, co, ci] = conv weight.
    b_ref, g_ref, bt_ref : (C, 1) f32 conv bias, BN gamma, BN beta.
    o_ref   : (C, P)         f32, normalized output (garbage at invalid lanes,
                             sliced away by the wrapper).
    """
    P = x_ref.shape[-1]
    n_taps = w_ref.shape[0]
    # Tap t <-> (di, dj) = divmod(t, 2); lane shift d = di*width + dj in the
    # flattened position space (valid output lanes never wrap, the mask /
    # wrapper slice discard the rest).
    shifts = [(t // 2) * width + (t % 2) for t in range(n_taps)]

    b = b_ref[...]                                    # (C, 1)

    def conv_step(s):
        # im2col contraction on the MXU: one lane rotation (XLU) + one
        # (C,C) x (C,P) dot per tap, f32 accumulation.
        acc = None
        for t, d in enumerate(shifts):
            tap = s if d == 0 else pltpu.roll(s, shift=P - d, axis=1)
            term = jnp.dot(w_ref[t], tap, preferred_element_type=jnp.float32)
            acc = term if acc is None else acc + term
        return acc + b                                # bias broadcast along lanes

    s1 = conv_step(x_ref[...])                        # conv1(x)
    s2 = conv_step(s1)                                # conv1(conv1(x))

    # TODO(synk): PyTorch BatchNorm1d rejects 4D input; implemented as per-channel
    # training-mode batch normalization (BatchNorm2d semantics).  Running-stat
    # buffers and the second (value-irrelevant) norm1 call are not modeled.
    m = mask_ref[...]                                 # (1, P), 0/1
    # Two fused reductions over the channel-stacked tensor; two-pass variance.
    mean = jnp.sum(s2 * m, axis=1, keepdims=True) * inv_count        # (C, 1)
    cen = s2 - mean                                                  # finite everywhere
    var = jnp.sum(cen * cen * m, axis=1, keepdims=True) * inv_count  # (C, 1), biased
    scale = jax.lax.rsqrt(var + eps) * g_ref[...]
    o_ref[...] = cen * scale + bt_ref[...]            # single lane-dense store


def model_forward(x_nchw, w_oihw, b, gamma, beta, *, eps=1e-5):
    N, C, H, W = x_nchw.shape
    O, I, KH, KW = w_oihw.shape
    assert (O, I, KH, KW) == (C, C, 2, 2)
    H2, W2 = H - 2, W - 2

    P0 = N * H * W
    P = ((P0 + 127) // 128) * 128                     # pad lane axis to 128-multiple

    x = x_nchw.astype(jnp.float32)
    # Channel-major, (n, h, w) flattened onto lanes (free XLA layout plumbing).
    x_flat = jnp.transpose(x, (1, 0, 2, 3)).reshape(C, P0)
    x_flat = jnp.pad(x_flat, ((0, 0), (0, P - P0)))

    # 0/1 mask of lanes that are valid final (post-second-conv) output positions.
    valid_hw = (jnp.arange(H)[:, None] < H2) & (jnp.arange(W)[None, :] < W2)
    mask = jnp.tile(valid_hw.reshape(-1), (N,)).astype(jnp.float32)
    mask = jnp.pad(mask, (0, P - P0)).reshape(1, P)

    # Per-tap (C_out, C_in) weight blocks: w4[di*KW+dj, co, ci] = w[co, ci, di, dj].
    w4 = jnp.transpose(w_oihw.astype(jnp.float32), (2, 3, 0, 1)).reshape(KH * KW, C, C)

    kernel = functools.partial(
        _fused_conv_conv_bn_kernel,
        width=W, inv_count=1.0 / float(N * H2 * W2), eps=eps)

    # Advisory cost estimate for XLA's scheduler.
    conv_flops = 2 * 2 * (KH * KW) * C * C * P        # two conv steps over P lanes
    bn_flops = 10 * C * P
    bytes_accessed = 4 * (2 * C * P + P + KH * KW * C * C + 3 * C)

    y_full = pl.pallas_call(
        kernel,
        out_shape=jax.ShapeDtypeStruct((C, P), jnp.float32),
        in_specs=[
            pl.BlockSpec(memory_space=pltpu.MemorySpace.VMEM),   # x (C, P)
            pl.BlockSpec(memory_space=pltpu.MemorySpace.VMEM),   # validity mask
            pl.BlockSpec(memory_space=pltpu.MemorySpace.VMEM),   # conv weights (taps, C, C)
            pl.BlockSpec(memory_space=pltpu.MemorySpace.VMEM),   # conv bias (C, 1)
            pl.BlockSpec(memory_space=pltpu.MemorySpace.VMEM),   # bn gamma  (C, 1)
            pl.BlockSpec(memory_space=pltpu.MemorySpace.VMEM),   # bn beta   (C, 1)
        ],
        out_specs=pl.BlockSpec(memory_space=pltpu.MemorySpace.VMEM),
        compiler_params=pltpu.CompilerParams(vmem_limit_bytes=4 << 20),
        cost_estimate=pl.CostEstimate(flops=conv_flops + bn_flops,
                                      transcendentals=C,
                                      bytes_accessed=bytes_accessed),
    )(x_flat, mask, w4,
      b.astype(jnp.float32).reshape(C, 1),
      gamma.astype(jnp.float32).reshape(C, 1),
      beta.astype(jnp.float32).reshape(C, 1))

    # Free XLA layout plumbing: unflatten, drop invalid border lanes, back to NCHW.
    y = y_full[:, :P0].reshape(C, N, H, W)[:, :, :H2, :W2]
    return jnp.transpose(y, (1, 0, 2, 3))


def ref_forward(x, w, b, gamma, beta, eps=1e-5):
    """Pure-JAX reference (NCHW), for correctness checking only."""
    dn = jax.lax.conv_dimension_numbers(x.shape, w.shape, ("NCHW", "OIHW", "NCHW"))

    def conv(inp):
        return jax.lax.conv_general_dilated(
            inp, w, (1, 1), "VALID", dimension_numbers=dn) + b[None, :, None, None]

    s = conv(conv(x))
    mean = s.mean(axis=(0, 2, 3), keepdims=True)
    var = ((s - mean) ** 2).mean(axis=(0, 2, 3), keepdims=True)
    return (s - mean) * jax.lax.rsqrt(var + eps) * gamma[None, :, None, None] \
        + beta[None, :, None, None]


if __name__ == "__main__":
    key = jax.random.PRNGKey(0)
    kx, kw, kb = jax.random.split(key, 3)

    N, C, H, W = 2, 3, 8, 8
    # Non-zero-mean activations exercise the two-pass variance path.
    x = jax.random.normal(kx, (N, C, H, W), dtype=jnp.float32) + 2.0

    # Conv2d(3, 3, 2) parameters, deterministic init (PyTorch-style uniform bound).
    fan_in = C * 2 * 2
    bound = 1.0 / math.sqrt(fan_in)
    w = jax.random.uniform(kw, (C, C, 2, 2), jnp.float32, -bound, bound)
    b = jax.random.uniform(kb, (C,), jnp.float32, -bound, bound)

    # BatchNorm1d(3) affine parameters at default init.
    gamma = jnp.ones((C,), jnp.float32)
    beta = jnp.zeros((C,), jnp.float32)

    out = model_forward(x, w, b, gamma, beta)
    out = jax.block_until_ready(out)

    ref = ref_forward(x, w, b, gamma, beta)
    assert out.shape == (N, C, H - 2, W - 2), out.shape
    assert jnp.allclose(out, ref, atol=1e-4, rtol=1e-3), \
        float(jnp.max(jnp.abs(out - ref)))

    print("KERNEL_OK")
</pallas_src>

<mosaic_0001>
module attributes {stable_mosaic.version = 11 : i64} {
  func.func @_fused_conv_conv_bn_kernel(%arg0: memref<3x128xf32, #tpu.memory_space<vmem>>, %arg1: memref<1x128xf32, #tpu.memory_space<vmem>>, %arg2: memref<4x3x3xf32, #tpu.memory_space<vmem>>, %arg3: memref<3x1xf32, #tpu.memory_space<vmem>>, %arg4: memref<3x1xf32, #tpu.memory_space<vmem>>, %arg5: memref<3x1xf32, #tpu.memory_space<vmem>>, %arg6: memref<3x128xf32, #tpu.memory_space<vmem>>) attributes {dimension_semantics = [], scalar_prefetch = 0 : i64, scratch_operands = 0 : i64, tpu.core_type = #tpu.core_type<tc>} {
    %c0 = arith.constant 0 : index
    %c0_0 = arith.constant 0 : index
    %0 = vector.load %arg3[%c0, %c0_0] : memref<3x1xf32, #tpu.memory_space<vmem>>, vector<3x1xf32>
    %c0_1 = arith.constant 0 : index
    %c0_2 = arith.constant 0 : index
    %1 = vector.load %arg0[%c0_1, %c0_2] : memref<3x128xf32, #tpu.memory_space<vmem>>, vector<3x128xf32>
    %c0_3 = arith.constant 0 : index
    %c0_4 = arith.constant 0 : index
    %c0_5 = arith.constant 0 : index
    %2 = vector.load %arg2[%c0_3, %c0_4, %c0_5] : memref<4x3x3xf32, #tpu.memory_space<vmem>>, vector<1x3x3xf32>
    %3 = vector.shape_cast %2 : vector<1x3x3xf32> to vector<3x3xf32>
    %cst = arith.constant dense<0.000000e+00> : vector<3x128xf32>
    %4 = tpu.matmul %3, %1, %cst {dimension_numbers = #tpu.dot_dimension_numbers<[1], [0], [0], [1], [0, 0, 1, 1], [], []>} : vector<3x3xf32>, vector<3x128xf32>, vector<3x128xf32> -> vector<3x128xf32>
    %c127_i32 = arith.constant 127 : i32
    %5 = tpu.dynamic_rotate %1 by %c127_i32 dim 1 : vector<3x128xf32>, i32 -> vector<3x128xf32>
    %c1 = arith.constant 1 : index
    %c0_6 = arith.constant 0 : index
    %c0_7 = arith.constant 0 : index
    %6 = vector.load %arg2[%c1, %c0_6, %c0_7] : memref<4x3x3xf32, #tpu.memory_space<vmem>>, vector<1x3x3xf32>
    %7 = vector.shape_cast %6 : vector<1x3x3xf32> to vector<3x3xf32>
    %cst_8 = arith.constant dense<0.000000e+00> : vector<3x128xf32>
    %8 = tpu.matmul %7, %5, %cst_8 {dimension_numbers = #tpu.dot_dimension_numbers<[1], [0], [0], [1], [0, 0, 1, 1], [], []>} : vector<3x3xf32>, vector<3x128xf32>, vector<3x128xf32> -> vector<3x128xf32>
    %9 = arith.addf %4, %8 : vector<3x128xf32>
    %c120_i32 = arith.constant 120 : i32
    %10 = tpu.dynamic_rotate %1 by %c120_i32 dim 1 : vector<3x128xf32>, i32 -> vector<3x128xf32>
    %c2 = arith.constant 2 : index
    %c0_9 = arith.constant 0 : index
    %c0_10 = arith.constant 0 : index
    %11 = vector.load %arg2[%c2, %c0_9, %c0_10] : memref<4x3x3xf32, #tpu.memory_space<vmem>>, vector<1x3x3xf32>
    %12 = vector.shape_cast %11 : vector<1x3x3xf32> to vector<3x3xf32>
    %cst_11 = arith.constant dense<0.000000e+00> : vector<3x128xf32>
    %13 = tpu.matmul %12, %10, %cst_11 {dimension_numbers = #tpu.dot_dimension_numbers<[1], [0], [0], [1], [0, 0, 1, 1], [], []>} : vector<3x3xf32>, vector<3x128xf32>, vector<3x128xf32> -> vector<3x128xf32>
    %14 = arith.addf %9, %13 : vector<3x128xf32>
    %c119_i32 = arith.constant 119 : i32
    %15 = tpu.dynamic_rotate %1 by %c119_i32 dim 1 : vector<3x128xf32>, i32 -> vector<3x128xf32>
    %c3 = arith.constant 3 : index
    %c0_12 = arith.constant 0 : index
    %c0_13 = arith.constant 0 : index
    %16 = vector.load %arg2[%c3, %c0_12, %c0_13] : memref<4x3x3xf32, #tpu.memory_space<vmem>>, vector<1x3x3xf32>
    %17 = vector.shape_cast %16 : vector<1x3x3xf32> to vector<3x3xf32>
    %cst_14 = arith.constant dense<0.000000e+00> : vector<3x128xf32>
    %18 = tpu.matmul %17, %15, %cst_14 {dimension_numbers = #tpu.dot_dimension_numbers<[1], [0], [0], [1], [0, 0, 1, 1], [], []>} : vector<3x3xf32>, vector<3x128xf32>, vector<3x128xf32> -> vector<3x128xf32>
    %19 = arith.addf %14, %18 : vector<3x128xf32>
    %20 = vector.broadcast %0 : vector<3x1xf32> to vector<3x128xf32>
    %21 = arith.addf %19, %20 : vector<3x128xf32>
    %c0_15 = arith.constant 0 : index
    %c0_16 = arith.constant 0 : index
    %c0_17 = arith.constant 0 : index
    %22 = vector.load %arg2[%c0_15, %c0_16, %c0_17] : memref<4x3x3xf32, #tpu.memory_space<vmem>>, vector<1x3x3xf32>
    %23 = vector.shape_cast %22 : vector<1x3x3xf32> to vector<3x3xf32>
    %cst_18 = arith.constant dense<0.000000e+00> : vector<3x128xf32>
    %24 = tpu.matmul %23, %21, %cst_18 {dimension_numbers = #tpu.dot_dimension_numbers<[1], [0], [0], [1], [0, 0, 1, 1], [], []>} : vector<3x3xf32>, vector<3x128xf32>, vector<3x128xf32> -> vector<3x128xf32>
    %c127_i32_19 = arith.constant 127 : i32
    %25 = tpu.dynamic_rotate %21 by %c127_i32_19 dim 1 : vector<3x128xf32>, i32 -> vector<3x128xf32>
    %c1_20 = arith.constant 1 : index
    %c0_21 = arith.constant 0 : index
    %c0_22 = arith.constant 0 : index
    %26 = vector.load %arg2[%c1_20, %c0_21, %c0_22] : memref<4x3x3xf32, #tpu.memory_space<vmem>>, vector<1x3x3xf32>
    %27 = vector.shape_cast %26 : vector<1x3x3xf32> to vector<3x3xf32>
    %cst_23 = arith.constant dense<0.000000e+00> : vector<3x128xf32>
    %28 = tpu.matmul %27, %25, %cst_23 {dimension_numbers = #tpu.dot_dimension_numbers<[1], [0], [0], [1], [0, 0, 1, 1], [], []>} : vector<3x3xf32>, vector<3x128xf32>, vector<3x128xf32> -> vector<3x128xf32>
    %29 = arith.addf %24, %28 : vector<3x128xf32>
    %c120_i32_24 = arith.constant 120 : i32
    %30 = tpu.dynamic_rotate %21 by %c120_i32_24 dim 1 : vector<3x128xf32>, i32 -> vector<3x128xf32>
    %c2_25 = arith.constant 2 : index
    %c0_26 = arith.constant 0 : index
    %c0_27 = arith.constant 0 : index
    %31 = vector.load %arg2[%c2_25, %c0_26, %c0_27] : memref<4x3x3xf32, #tpu.memory_space<vmem>>, vector<1x3x3xf32>
    %32 = vector.shape_cast %31 : vector<1x3x3xf32> to vector<3x3xf32>
    %cst_28 = arith.constant dense<0.000000e+00> : vector<3x128xf32>
    %33 = tpu.matmul %32, %30, %cst_28 {dimension_numbers = #tpu.dot_dimension_numbers<[1], [0], [0], [1], [0, 0, 1, 1], [], []>} : vector<3x3xf32>, vector<3x128xf32>, vector<3x128xf32> -> vector<3x128xf32>
    %34 = arith.addf %29, %33 : vector<3x128xf32>
    %c119_i32_29 = arith.constant 119 : i32
    %35 = tpu.dynamic_rotate %21 by %c119_i32_29 dim 1 : vector<3x128xf32>, i32 -> vector<3x128xf32>
    %c3_30 = arith.constant 3 : index
    %c0_31 = arith.constant 0 : index
    %c0_32 = arith.constant 0 : index
    %36 = vector.load %arg2[%c3_30, %c0_31, %c0_32] : memref<4x3x3xf32, #tpu.memory_space<vmem>>, vector<1x3x3xf32>
    %37 = vector.shape_cast %36 : vector<1x3x3xf32> to vector<3x3xf32>
    %cst_33 = arith.constant dense<0.000000e+00> : vector<3x128xf32>
    %38 = tpu.matmul %37, %35, %cst_33 {dimension_numbers = #tpu.dot_dimension_numbers<[1], [0], [0], [1], [0, 0, 1, 1], [], []>} : vector<3x3xf32>, vector<3x128xf32>, vector<3x128xf32> -> vector<3x128xf32>
    %39 = arith.addf %34, %38 : vector<3x128xf32>
    %40 = vector.broadcast %0 : vector<3x1xf32> to vector<3x128xf32>
    %41 = arith.addf %39, %40 : vector<3x128xf32>
    %c0_34 = arith.constant 0 : index
    %c0_35 = arith.constant 0 : index
    %42 = vector.load %arg1[%c0_34, %c0_35] : memref<1x128xf32, #tpu.memory_space<vmem>>, vector<1x128xf32>
    %43 = vector.broadcast %42 : vector<1x128xf32> to vector<3x128xf32>
    %44 = arith.mulf %41, %43 : vector<3x128xf32>
    %cst_36 = arith.constant dense<0.000000e+00> : vector<3xf32>
    %45 = vector.multi_reduction <add>, %44, %cst_36 [1] : vector<3x128xf32> to vector<3xf32>
    %46 = vector.shape_cast %45 : vector<3xf32> to vector<3x1xf32>
    %cst_37 = arith.constant 0.013888889 : f32
    %47 = vector.broadcast %cst_37 : f32 to vector<3x1xf32>
    %48 = arith.mulf %46, %47 : vector<3x1xf32>
    %49 = vector.broadcast %48 : vector<3x1xf32> to vector<3x128xf32>
    %50 = arith.subf %41, %49 : vector<3x128xf32>
    %51 = arith.mulf %50, %50 : vector<3x128xf32>
    %52 = vector.broadcast %42 : vector<1x128xf32> to vector<3x128xf32>
    %53 = arith.mulf %51, %52 : vector<3x128xf32>
    %cst_38 = arith.constant dense<0.000000e+00> : vector<3xf32>
    %54 = vector.multi_reduction <add>, %53, %cst_38 [1] : vector<3x128xf32> to vector<3xf32>
    %55 = vector.shape_cast %54 : vector<3xf32> to vector<3x1xf32>
    %cst_39 = arith.constant 0.013888889 : f32
    %56 = vector.broadcast %cst_39 : f32 to vector<3x1xf32>
    %57 = arith.mulf %55, %56 : vector<3x1xf32>
    %cst_40 = arith.constant 9.99999974E-6 : f32
    %58 = vector.broadcast %cst_40 : f32 to vector<3x1xf32>
    %59 = arith.addf %57, %58 : vector<3x1xf32>
    %60 = math.rsqrt %59 : vector<3x1xf32>
    %c0_41 = arith.constant 0 : index
    %c0_42 = arith.constant 0 : index
    %61 = vector.load %arg4[%c0_41, %c0_42] : memref<3x1xf32, #tpu.memory_space<vmem>>, vector<3x1xf32>
    %62 = arith.mulf %60, %61 : vector<3x1xf32>
    %63 = vector.broadcast %62 : vector<3x1xf32> to vector<3x128xf32>
    %64 = arith.mulf %50, %63 : vector<3x128xf32>
    %c0_43 = arith.constant 0 : index
    %c0_44 = arith.constant 0 : index
    %65 = vector.load %arg5[%c0_43, %c0_44] : memref<3x1xf32, #tpu.memory_space<vmem>>, vector<3x1xf32>
    %66 = vector.broadcast %65 : vector<3x1xf32> to vector<3x128xf32>
    %67 = arith.addf %64, %66 : vector<3x128xf32>
    %c0_45 = arith.constant 0 : index
    %c0_46 = arith.constant 0 : index
    %68 = vector.load %arg6[%c0_45, %c0_46] : memref<3x128xf32, #tpu.memory_space<vmem>>, vector<3x128xf32>
    tpu.vector_store %arg6[%c0_45, %c0_46], %67 {strides = array<i32>} : memref<3x128xf32, #tpu.memory_space<vmem>>, vector<3x128xf32>,
    return
  }
}

</mosaic_0001>

<bundles_post_ra>
// kernel: tpu_custom_call.1
= control target key start
LH: loop header
LB: loop body
LE: loop exit
PB: predicated region body
PF: predicated region fallthrough
CT: control target
= control target key end

     0   :  { %s368_s23 = smov 120   ;;  %s462_s0 = inlined_call_operand.vmem [shape: f32[3,128], index: 0, kind: input, shape index: {}]   ;;  %s463_s1 = inlined_call_operand.vmem [shape: f32[1,128], index: 1, kind: input, shape index: {}]   ;;  %s464_s2 = inlined_call_operand.vmem [shape: f32[4,3,3], index: 2, kind: input, shape index: {}]   ;;  %s465_s3 = inlined_call_operand.vmem [shape: f32[3,1], index: 3, kind: input, shape index: {}]   ;;  %s466_s4 = inlined_call_operand.vmem [shape: f32[3,1], index: 4, kind: input, shape index: {}]   ;;  %s467_s5 = inlined_call_operand.vmem [shape: f32[3,1], index: 5, kind: input, shape index: {}]   ;;  %s468_s6 = inlined_call_operand.hbm [shape: f32[3,128], index: 6, kind: output, shape index: {}]  }
   0x1   :  { %v25_v0 = vld [vmem:[%s462_s0] sm:$0x7] }
   0x2   :  { %85 = vrot.lane.b32.xlu0 %v25_v0, %s368_s23 }
   0x3   :  { %11 = vsyncpa [#allocation3], 0  ;;  %s369_s24 = smov 127   ;;  %s370_s25 = smov 119   ;;  %vm35_vm0 = vcmask 1042432   ;;  %vm31_vm1 = vcmask 23552  }
   0x4   :  { %27 = vrot.lane.b32.xlu1 %v25_v0, %s369_s24  ;;  %316 = vmatpush.msk.msra.mxu1 %vm35_vm0, %v25_v0  ;;  %v26_v1 = vld [vmem:[%s464_s2] sm:$0x7]  ;;  %v371_v2 = vmov 0   ;;  %v318_v4 = vld [vmem:[%s464_s2 + $0x8] sm:$0x7]  ;;  %s372_s14 = smov [#allocation2]  }
   0x5   :  { %317 = vmatmul.msk.f32.vlgmr.msra.gmra.mxu1 %vm31_vm1, %v26_v1  ;;  %337 = vset.pattern.permute.xlu1 %v371_v2  ;;  %v24_v3 = vld [vmem:[%s465_s3] sm:$0x7]  ;;  %v313_v6 = vld [vmem:[%s464_s2 + $0x4] sm:$0x7]  ;;  %v321_v8 = vld [vmem:[%s464_s2 + $0xc] sm:$0x7] }
   0x6   :  { %338 = vset.pattern.permute.xlu0 %v371_v2  ;;  %v339_v29 = vld [vmem:[%s463_s1] ss:$0 sm:$0xff]  ;;  %s302_s15 = sshll.u32 %s372_s14, 4  ;;  %s304_s18 = sshll.u32 %s468_s6, 4  ;;  %s303_s15 = int_to_ptr.vmem [resolvable:$true] %s302_s15  ;;  %s305_s18 = int_to_ptr.hbm [resolvable:$true] %s304_s18 }
   0x7   :  { %v281_v48 = vld [vmem:[%s466_s4] sm:$0x7] }
   0x8   :  { %v289_v51 = vld [vmem:[%s467_s5] sm:$0x7] }
   0xa   :  { %116 = vrot.lane.b32.xlu0 %v25_v0, %s370_s25 }
   0xc   :  { %149 = vperm.xlu1 %337, %v24_v3  }
  0x74   :  { %v86_v5 = vpop.permute.xlu0 %85 }
  0x75   :  { %319 = vmatpush.msk.msra.mxu2 %vm35_vm0, %v86_v5 }
  0x76   :  { %v28_v7 = vpop.permute.xlu1 %27  ;;  %320 = vmatmul.msk.f32.vlgmr.msra.gmra.mxu2 %vm31_vm1, %v318_v4 }
  0x77   :  { %314 = vmatpush.msk.msra.mxu0 %vm35_vm0, %v28_v7 }
  0x78   :  { %315 = vmatmul.msk.f32.vlgmr.msra.gmra.mxu0 %vm31_vm1, %v313_v6 }
  0x7c   :  { %v117_v9 = vpop.permute.xlu0 %116 }
  0x7d   :  { %322 = vmatpush.msk.msra.mxu3 %vm35_vm0, %v117_v9 }
  0x7e   :  { %323 = vmatmul.msk.f32.vlgmr.msra.gmra.mxu3 %vm31_vm1, %v321_v8  ;;  %v150_v16 = vpop.permute.xlu1 %149 }
  0x82   :  { %v82_v11 = vpop.f32.mrf.mxu1 }
  0xf5   :  { %v56_v10 = vpop.f32.mrf.mxu0 }
  0xf6   :  { %v83_v12 = vadd.f32 %v82_v11, %v56_v10 }
  0xf9   :  { %v112_v13 = vpop.f32.mrf.mxu2 }
  0xfa   :  { %v115_v14 = vadd.f32 %v112_v13, %v83_v12 }
 0x101   :  { %v143_v15 = vpop.f32.mrf.mxu3 }
 0x102   :  { %v146_v17 = vadd.f32 %v143_v15, %v115_v14 }
 0x104   :  { %v152_v18 = vadd.f32 %v150_v16, %v146_v17 }
 0x106   :  { %153 = vrot.lane.b32.xlu0 %v152_v18, %s369_s24  ;;  %201 = vrot.lane.b32.xlu2 %v152_v18, %s368_s23 }
 0x107   :  { %326 = vmatpush.msk.msrb.mxu1 %vm35_vm0, %v152_v18 }
 0x108   :  { %327 = vmatmul.msk.f32.vlgmr.msrb.gmra.mxu1 %vm31_vm1, %v26_v1 }
 0x10e   :  { %227 = vrot.lane.b32.xlu2 %v152_v18, %s370_s25 }
 0x160   :  { %v202_v19 = vpop.permute.xlu2 %201 }
 0x161   :  { %328 = vmatpush.msk.msrb.mxu2 %vm35_vm0, %v202_v19 }
 0x162   :  { %329 = vmatmul.msk.f32.vlgmr.msrb.gmra.mxu2 %vm31_vm1, %v318_v4 }
 0x168   :  { %v228_v20 = vpop.permute.xlu2 %227 }
 0x169   :  { %330 = vmatpush.msk.msrb.mxu3 %vm35_vm0, %v228_v20 }
 0x16a   :  { %331 = vmatmul.msk.f32.vlgmr.msrb.gmra.mxu3 %vm31_vm1, %v321_v8 }
 0x178   :  { %v154_v21 = vpop.permute.xlu0 %153 }
 0x179   :  { %324 = vmatpush.msk.msrb.mxu0 %vm35_vm0, %v154_v21 }
 0x17a   :  { %325 = vmatmul.msk.f32.vlgmr.msrb.gmra.mxu0 %vm31_vm1, %v313_v6 }
 0x185   :  { %v198_v22 = vpop.f32.mrf.mxu1 }
 0x1e5   :  { %v223_v24 = vpop.f32.mrf.mxu2 }
 0x1ed   :  { %v249_v26 = vpop.f32.mrf.mxu3 }
 0x1f7   :  { %v175_v23 = vpop.f32.mrf.mxu0 }
 0x1f8   :  { %v199_v25 = vadd.f32 %v198_v22, %v175_v23 }
 0x1fa   :  { %v226_v27 = vadd.f32 %v223_v24, %v199_v25 }
 0x1fc   :  { %v252_v28 = vadd.f32 %v249_v26, %v226_v27 }
 0x1fe   :  { %v253_v30 = vadd.f32 %v252_v28, %v150_v16 }
 0x200   :  { %v258_v31 = vmul.f32 %v339_v29, %v253_v30 }
 0x202   :  { %v259_v32 = vsel %vm35_vm0, %v258_v31, 0.0 }
 0x203   :  { %260 = vadd.xlane.f32.xlu1 %v259_v32 }
 0x276   :  { %v261_v33 = vpop.xlane.xlu1 %260 }
 0x277   :  { %v262_v34 = vmul.f32 0.013888889, %v261_v33 }
 0x279   :  { %v263_v35 = vsub.f32 %v253_v30, %v262_v34 }
 0x27b   :  { %v264_v36 = vmul.f32 %v263_v35, %v263_v35 }
 0x27d   :  { %v265_v37 = vmul.f32 %v339_v29, %v264_v36 }
 0x27f   :  { %v266_v38 = vsel %vm35_vm0, %v265_v37, 0.0 }
 0x280   :  { %267 = vadd.xlane.f32.xlu2 %v266_v38 }
 0x2f3   :  { %v268_v39 = vpop.xlane.xlu2 %267 }
 0x2f4   :  { %v269_v40 = vmul.f32 0.013888889, %v268_v39 }
 0x2f6   :  { %v270_v41 = vadd.f32 1e-05, %v269_v40 }
 0x2f8   :  { %340 = vrsqrt.f32 %v270_v41  ;;  %vm277_vm3 = vweird.f32 %v270_v41 }
 0x2fe   :  { %v341_v42 = vpop.eup %340 }
 0x2ff   :  { %v272_v43 = vmul.f32 %v341_v42, %v270_v41  ;;  %vm278_vm2 = vweird.f32 %v341_v42 }
 0x300   :  { %vm279_vm4 = vmor %vm277_vm3, %vm278_vm2 }
 0x301   :  { %v273_v44 = vmul.f32 %v341_v42, %v272_v43 }
 0x303   :  { %v274_v45 = vmul.f32 0.5, %v273_v44 }
 0x305   :  { %v275_v46 = vsub.f32 1.5, %v274_v45 }
 0x307   :  { %v276_v47 = vmul.f32 %v341_v42, %v275_v46 }
 0x309   :  { %v280_v49 = vsel %vm279_vm4, %v341_v42, %v276_v47 }
 0x30a   :  { %v282_v50 = vmul.f32 %v281_v48, %v280_v49 }
 0x30c   :  { %285 = vperm.xlu0 %338, %v282_v50  }
 0x314   :  { %292 = vperm.xlu0 %338, %v289_v51  }
 0x37e   :  { %v286_v52 = vpop.permute.xlu0 %285 }
 0x37f   :  { %v288_v53 = vmul.f32 %v286_v52, %v263_v35 }
 0x386   :  { %v293_v54 = vpop.permute.xlu0 %292 }
 0x387   :  { %v295_v55 = vadd.f32 %v293_v54, %v288_v53 }
 0x389   :  { %296 = vst [vmem:[#allocation2] sm:$0x7] %v295_v55 }
 0x38a   :  { %307 = dma.vmem_to_hbm [thread:$0]  %s303_s15, 64, %s305_s18, [#allocation3]  }
 0x38b   :  { %366 = dma.done.wait [#allocation3], 64  }
 0x38c   :  { %367 = vsyncadd [#allocation3], 4294967232 }
 0x38d   :  { %312 = vsyncpa [#allocation3], 1 }

</bundles_post_ra>
